<compile_context>
chip_gen: v7x
topology: tpu7x:2x2x1
jax: 0.10.0
libtpu: 0.0.40
codegen_flags: <defaults>
</compile_context>

<pallas_src>
import functools

import jax
import jax.numpy as jnp
from jax.experimental import pallas as pl
from jax.experimental.pallas import tpu as pltpu

_LN_EPS = 1e-12
_NORM_EPS = 1e-12


def _round_up(x, m):
    return ((x + m - 1) // m) * m


def _vmem_limit_bytes():
    """Per-generation scoped-VMEM limit (v7x: 64 MiB physical, v5e/v6e: 128 MiB)."""
    try:
        cap = pltpu.get_tpu_info().vmem_capacity_bytes
        return min(int(cap * 0.70), 100 * 1024 * 1024)
    except Exception:
        pass
    try:
        kind = jax.devices()[0].device_kind.lower()
    except Exception:
        kind = ""
    if "v7" in kind:
        return 44 * 1024 * 1024
    return 96 * 1024 * 1024


# ---------------------------------------------------------------------------
# Kernel 1: one-shot row L2-normalization of the class weight (grid-invariant,
# hoisted out of the batch loop).  Optionally emits the result pre-transposed
# to (D, tile_c) so the main kernel runs a plain MK x KN matmul.
# ---------------------------------------------------------------------------
def _normalize_rows_kernel(w_ref, o_ref, *, transpose):
    w = w_ref[...].astype(jnp.float32)
    ssq = jnp.sum(w * w, axis=-1, keepdims=True)
    # 1 / max(||w||, eps) == rsqrt(max(ssq, eps^2))  (EUP rsqrt, no divide).
    inv = jax.lax.rsqrt(jnp.maximum(ssq, _NORM_EPS * _NORM_EPS))
    wn = w * inv
    if transpose:
        wn = wn.T
    o_ref[...] = wn.astype(o_ref.dtype)


def _normalize_weight(weight_padded, out_dtype, tile_c, transpose, vmem_limit):
    c_pad, d = weight_padded.shape
    out_shape = (d, c_pad) if transpose else (c_pad, d)
    out_block = (d, tile_c) if transpose else (tile_c, d)
    out_map = (lambda i: (0, i)) if transpose else (lambda i: (i, 0))
    return pl.pallas_call(
        functools.partial(_normalize_rows_kernel, transpose=transpose),
        out_shape=jax.ShapeDtypeStruct(out_shape, out_dtype),
        grid_spec=pltpu.PrefetchScalarGridSpec(
            num_scalar_prefetch=0,
            grid=(c_pad // tile_c,),
            in_specs=[pl.BlockSpec((tile_c, d), lambda i: (i, 0))],
            out_specs=pl.BlockSpec(out_block, out_map),
        ),
        compiler_params=pltpu.CompilerParams(
            dimension_semantics=("parallel",),
            vmem_limit_bytes=vmem_limit,
        ),
    )(weight_padded)


# ---------------------------------------------------------------------------
# Kernel 2: LayerNorm(x) tile (f32 math) + matmul against the normalized
# weight tile (bf16 operands by default, f32 accumulation on the MXU).
# ---------------------------------------------------------------------------
def _layernorm_f32(x_ref):
    x = x_ref[...].astype(jnp.float32)
    mean = jnp.mean(x, axis=-1, keepdims=True)
    xc = x - mean
    var = jnp.mean(xc * xc, axis=-1, keepdims=True)
    return xc * jax.lax.rsqrt(var + _LN_EPS)


def _ln_dot_kn_kernel(x_ref, wt_ref, o_ref, *, compute_dtype):
    """wt_ref is (D, tile_c): plain MK x KN matmul."""
    xn = _layernorm_f32(x_ref).astype(compute_dtype)
    o_ref[...] = jnp.dot(
        xn, wt_ref[...], preferred_element_type=jnp.float32
    ).astype(o_ref.dtype)


def _ln_dot_nt_kernel(x_ref, wn_ref, o_ref, *, compute_dtype):
    """wn_ref is (tile_c, D): NT dot_general (contract lane axes)."""
    xn = _layernorm_f32(x_ref).astype(compute_dtype)
    o_ref[...] = jax.lax.dot_general(
        xn, wn_ref[...],
        dimension_numbers=(((1,), (1,)), ((), ())),
        preferred_element_type=jnp.float32,
    ).astype(o_ref.dtype)


def layer_normed_classifier(x, weight, *, tile_n=256, compute_dtype=jnp.bfloat16):
    """x: (..., D), weight: (C, D) -> (..., C)."""
    orig_shape = x.shape
    D = orig_shape[-1]
    x2 = x.reshape(-1, D)
    N = x2.shape[0]
    C, Dw = weight.shape
    assert D == Dw

    vmem_limit = _vmem_limit_bytes()
    budget = int(vmem_limit * 0.55)

    cbytes = jnp.dtype(compute_dtype).itemsize
    xbytes = jnp.dtype(x.dtype).itemsize
    obytes = xbytes
    wbytes = jnp.dtype(weight.dtype).itemsize

    # Class tile: lane-dense (>=128); 256-aligned for the 256x256 MXU when the
    # classifier is large; capped so (weight tile x 2 buffers) stays within
    # roughly half the VMEM budget (the v7x 64-MiB constraint).
    c_align = 128 if C <= 128 else 256
    tile_c_cap = max(
        min((budget // 2) // (2 * D * cbytes),
            (9 * budget // 10) // (2 * D * (wbytes + cbytes))),
        c_align,
    )
    tile_c = min(_round_up(C, c_align), (tile_c_cap // c_align) * c_align)
    tile_c = max(tile_c, c_align)
    C_pad = _round_up(C, tile_c)
    nc = C_pad // tile_c

    # Batch tile from the remaining budget, 8-aligned.
    per_row = 2 * (D * xbytes + tile_c * obytes)
    rem = max(budget - 2 * D * tile_c * cbytes, per_row * 8)
    tile_n = max(8, min(_round_up(tile_n, 8), (rem // per_row) // 8 * 8))
    tile_n = min(tile_n, _round_up(max(N, 1), 8))
    nb = pl.cdiv(N, tile_n)
    # Give the two v7x TensorCores at least two parallel steps to work on.
    if nc * nb < 2 and N > 8:
        tile_n = _round_up(pl.cdiv(N, 2), 8)
        nb = pl.cdiv(N, tile_n)

    # One-shot weight L2-normalization (hoisted), emitted in compute_dtype and
    # pre-transposed to (D, C_pad) when the feature dim is lane-aligned.
    transpose_w = (D % 128 == 0)
    w_p = weight if C_pad == C else jnp.pad(weight, ((0, C_pad - C), (0, 0)))
    wn = _normalize_weight(w_p, compute_dtype, tile_c, transpose_w, vmem_limit)

    kernel = _ln_dot_kn_kernel if transpose_w else _ln_dot_nt_kernel
    w_spec = (
        pl.BlockSpec((D, tile_c), lambda c, n: (0, c))
        if transpose_w
        else pl.BlockSpec((tile_c, D), lambda c, n: (c, 0))
    )

    cost = pl.CostEstimate(
        flops=2 * N * D * C_pad,
        transcendentals=N + C_pad,
        bytes_accessed=N * D * xbytes + D * C_pad * cbytes + N * C_pad * obytes,
    )

    out = pl.pallas_call(
        functools.partial(kernel, compute_dtype=compute_dtype),
        out_shape=jax.ShapeDtypeStruct((N, C_pad), x.dtype),
        grid_spec=pltpu.PrefetchScalarGridSpec(
            num_scalar_prefetch=0,
            # Class tiles outermost so the weight tile stays VMEM-resident
            # across the inner batch-tile loop; x is NOT padded — the ragged
            # tail block's junk rows are masked out of the store and LN is
            # strictly row-wise so they cannot contaminate valid rows.
            grid=(nc, nb),
            in_specs=[
                pl.BlockSpec((tile_n, D), lambda c, n: (n, 0)),
                w_spec,
            ],
            out_specs=pl.BlockSpec((tile_n, tile_c), lambda c, n: (n, c)),
        ),
        compiler_params=pltpu.CompilerParams(
            dimension_semantics=("parallel", "parallel"),
            vmem_limit_bytes=vmem_limit,
        ),
        cost_estimate=cost,
    )(x2, wn)

    if C_pad != C:
        out = out[:, :C]
    return out.reshape(*orig_shape[:-1], C)


def init_classifier_weight(key, num_classes, feat_dim, dtype=jnp.float32):
    """Mirror: uniform_(-1,1).renorm_(2, 0, 1e-5).mul_(1e5) — deterministic."""
    w = jax.random.uniform(
        key, (num_classes, feat_dim), dtype=jnp.float32, minval=-1.0, maxval=1.0
    )
    row_norm = jnp.sqrt(jnp.sum(w * w, axis=-1, keepdims=True))
    maxnorm = 1e-5
    scale = jnp.where(row_norm > maxnorm, maxnorm / (row_norm + 1e-7), 1.0)
    w = w * scale * 1e5
    return w.astype(dtype)


def _reference(x, weight):
    x32 = x.astype(jnp.float32)
    mean = jnp.mean(x32, axis=-1, keepdims=True)
    var = jnp.mean((x32 - mean) ** 2, axis=-1, keepdims=True)
    xn = (x32 - mean) / jnp.sqrt(var + _LN_EPS)
    w32 = weight.astype(jnp.float32)
    wn = w32 / jnp.maximum(
        jnp.sqrt(jnp.sum(w32 * w32, axis=-1, keepdims=True)), _NORM_EPS
    )
    return (xn @ wn.T).astype(x.dtype)


if __name__ == "__main__":
    key = jax.random.PRNGKey(0)
    k_x, k_w = jax.random.split(key)

    # Small shapes; N and C deliberately NOT tile-aligned (ragged batch tail
    # and padded class dim both exercised).
    N, D, C = 10, 256, 100  # batch, feat_dim, num_classes
    x = jax.random.normal(k_x, (N, D), dtype=jnp.float32)
    weight = init_classifier_weight(k_w, C, D, dtype=jnp.float32)

    y_ref = _reference(x, weight)

    # f32 compute path — tight numerical check.
    y32 = jax.block_until_ready(
        layer_normed_classifier(x, weight, compute_dtype=jnp.float32)
    )
    assert y32.shape == (N, C)
    assert jnp.allclose(y32, y_ref, atol=1e-4, rtol=1e-4), float(
        jnp.max(jnp.abs(y32 - y_ref))
    )

    # Default bf16 MXU fast path (bf16 operands, f32 accumulation) — loose check.
    y16 = jax.block_until_ready(layer_normed_classifier(x, weight))
    assert y16.shape == (N, C)
    assert jnp.allclose(y16, y_ref, atol=1e-1, rtol=1e-1), float(
        jnp.max(jnp.abs(y16 - y_ref))
    )

    print("KERNEL_OK")
</pallas_src>

<mosaic_0001>
module attributes {stable_mosaic.version = 11 : i64} {
  func.func @_normalize_rows_kernel(%arg0: i32, %arg1: memref<128x256xf32, #tpu.memory_space<vmem>>, %arg2: memref<256x128xf32, #tpu.memory_space<vmem>>) attributes {dimension_semantics = [#tpu.dimension_semantics<parallel>], iteration_bounds = array<i64: 1>, scalar_prefetch = 0 : i64, scratch_operands = 0 : i64, tpu.core_type = #tpu.core_type<tc>, window_params = [{transform_indices = @transform_0, window_bounds = array<i64: 128, 256>}, {transform_indices = @transform_1, window_bounds = array<i64: 256, 128>}]} {
    %c0 = arith.constant 0 : index
    %c0_0 = arith.constant 0 : index
    %0 = vector.load %arg1[%c0, %c0_0] : memref<128x256xf32, #tpu.memory_space<vmem>>, vector<128x256xf32>
    %1 = arith.mulf %0, %0 : vector<128x256xf32>
    %cst = arith.constant dense<0.000000e+00> : vector<128xf32>
    %2 = vector.multi_reduction <add>, %1, %cst [1] : vector<128x256xf32> to vector<128xf32>
    %3 = vector.shape_cast %2 : vector<128xf32> to vector<128x1xf32>
    %cst_1 = arith.constant 1.000000e-24 : f32
    %4 = vector.broadcast %cst_1 : f32 to vector<128x1xf32>
    %5 = arith.maximumf %3, %4 : vector<128x1xf32>
    %6 = math.rsqrt %5 : vector<128x1xf32>
    %7 = vector.broadcast %6 : vector<128x1xf32> to vector<128x256xf32>
    %8 = arith.mulf %0, %7 : vector<128x256xf32>
    %9 = tpu.transpose %8, [1, 0] : vector<128x256xf32> -> vector<256x128xf32>
    %c0_2 = arith.constant 0 : index
    %c0_3 = arith.constant 0 : index
    %10 = vector.load %arg2[%c0_2, %c0_3] : memref<256x128xf32, #tpu.memory_space<vmem>>, vector<256x128xf32>
    tpu.vector_store %arg2[%c0_2, %c0_3], %9 {strides = array<i32>} : memref<256x128xf32, #tpu.memory_space<vmem>>, vector<256x128xf32>,
    return
  }
  func.func @transform_0(%arg0: i32) -> (i32, i32) {
    %c0_i32 = arith.constant 0 : i32
    %c0_i32_0 = arith.constant 0 : i32
    return %arg0, %c0_i32 : i32, i32
  }
  func.func @transform_1(%arg0: i32) -> (i32, i32) {
    %c0_i32 = arith.constant 0 : i32
    %c0_i32_0 = arith.constant 0 : i32
    return %c0_i32, %arg0 : i32, i32
  }
}

</mosaic_0001>

<bundles_post_ra>
// kernel: tpu_custom_call.1
= control target key start
LH: loop header
LB: loop body
LE: loop exit
PB: predicated region body
PF: predicated region fallthrough
CT: control target
= control target key end

     0   :  { %6 = vsyncpa [#allocation3], 0  ;;  %s598_s0 = inlined_call_operand.hbm [shape: f32[128,256], index: 0, kind: input, shape index: {}]   ;;  %s599_s1 = inlined_call_operand.hbm [shape: f32[256,128], index: 1, kind: output, shape index: {}]  }
   0x1   :  { %7 = vsyncpa [#allocation4], 0  ;;  %s398_s6 = smov [#allocation2]   ;;  %s350_s10 = scalar_lea.hbm %s598_s0, 4096 }
   0x2   :  { %s13_s7 = sshll.u32 %s398_s6, 4  ;;  %p351_p0 = scmp.ne.s32.totalorder %s598_s0, %s350_s10  ;;  %s14_s7 = int_to_ptr.vmem [resolvable:$true] %s13_s7 }
   0x3   :  { %p354_p1 = scmp.lt.u32.totalorder %s350_s10, %s598_s0 }
   0x5   :  { %p356_p2 = pnand %p354_p1, %p351_p0 }
   0x7   :  { %359 = shalt.err (!%p356_p2)
}
   0x8   :  { %s360_s15 = scalar_lea.vmem %s14_s7, 4096  ;;  %p365_p4 = scmp.lt.s32.totalorder %s14_s7, %s14_s7 }
   0x9   :  { %p361_p3 = scmp.ne.s32.totalorder %s14_s7, %s360_s15  ;;  %p366_p5 = scmp.lt.s32.totalorder %s360_s15, %s360_s15 }
   0xb   :  { %p367_p6 = por %p366_p5, %p365_p4 }
   0xd   :  { %p368_p7 = pnand %p367_p6, %p361_p3 }
   0xf   :  { %371 = shalt.err (!%p368_p7)
}
  0x10   :  { %s399_s16 = smov 256   ;;  %s400_s17 = smov 16  }
  0x11   :  { %19 = dma.hbm_to_vmem [thread:$0]  %s598_s0, 4096, %s14_s7, [#allocation3], %s399_s16, %s399_s16, %s400_s17  }
  0x12   :  { %394 = dma.done.wait [#allocation3], 4096  }
  0x13   :  { %395 = vsyncadd [#allocation3], 4294963200  ;;  %v426_v0 = vld [vmem:[#allocation2] sm:$0xff]  ;;  %v428_v1 = vld [vmem:[#allocation2 + $0x8] sm:$0xff]  ;;  %s401_s0 = smov [#allocation5]  }
  0x14   :  { %v430_v2 = vld [vmem:[#allocation2 + $0x10] sm:$0xff]  ;;  %v55_v3 = vmul.f32 %v426_v0, %v426_v0  ;;  %v56_v4 = vmul.f32 %v428_v1, %v428_v1  ;;  %v436_v5 = vld [vmem:[#allocation2 + $0x18] sm:$0xff]  ;;  %v440_v7 = vld [vmem:[#allocation2 + $0x20] sm:$0xff]  ;;  %s300_s20 = sshll.u32 %s401_s0, 4  ;;  %s301_s20 = int_to_ptr.vmem [resolvable:$true] %s300_s20 }
  0x15   :  { %v57_v6 = vmul.f32 %v430_v2, %v430_v2  ;;  %v442_v8 = vld [vmem:[#allocation2 + $0x28] sm:$0xff]  ;;  %v58_v9 = vmul.f32 %v436_v5, %v436_v5  ;;  %v59_v10 = vmul.f32 %v440_v7, %v440_v7  ;;  %v450_v12 = vld [vmem:[#allocation2 + $0x30] sm:$0xff]  ;;  %v452_v13 = vld [vmem:[#allocation2 + $0x38] sm:$0xff]  ;;  %s372_s21 = scalar_lea.vmem %s301_s20, 4096  ;;  %p377_p9 = scmp.lt.s32.totalorder %s301_s20, %s301_s20 }
  0x16   :  { %v60_v11 = vmul.f32 %v442_v8, %v442_v8  ;;  %v454_v14 = vld [vmem:[#allocation2 + $0x40] sm:$0xff]  ;;  %v87_v15 = vadd.f32 %v56_v4, %v55_v3  ;;  %v61_v16 = vmul.f32 %v450_v12, %v450_v12  ;;  %v62_v17 = vmul.f32 %v452_v13, %v452_v13  ;;  %v460_v18 = vld [vmem:[#allocation2 + $0x48] sm:$0xff]  ;;  %v462_v19 = vld [vmem:[#allocation2 + $0x50] sm:$0xff]  ;;  %p373_p8 = scmp.ne.s32.totalorder %s301_s20, %s372_s21  ;;  %p378_p10 = scmp.lt.s32.totalorder %s372_s21, %s372_s21 }
  0x17   :  { %v464_v20 = vld [vmem:[#allocation2 + $0x58] sm:$0xff]  ;;  %v90_v22 = vadd.f32 %v58_v9, %v57_v6  ;;  %v63_v23 = vmul.f32 %v454_v14, %v454_v14  ;;  %v64_v24 = vmul.f32 %v460_v18, %v460_v18  ;;  %v65_v26 = vmul.f32 %v462_v19, %v462_v19  ;;  %v474_v28 = vld [vmem:[#allocation2 + $0x60] sm:$0xff]  ;;  %v476_v29 = vld [vmem:[#allocation2 + $0x68] sm:$0xff] }
  0x18   :  { %v93_v21 = vadd.f32 %v60_v11, %v59_v10  ;;  %88 = vadd.xlane.f32.xlu0 %v87_v15  ;;  %v96_v25 = vadd.f32 %v62_v17, %v61_v16  ;;  %v66_v27 = vmul.f32 %v464_v20, %v464_v20  ;;  %v478_v30 = vld [vmem:[#allocation2 + $0x70] sm:$0xff]  ;;  %v480_v31 = vld [vmem:[#allocation2 + $0x78] sm:$0xff]  ;;  %v67_v33 = vmul.f32 %v474_v28, %v474_v28  ;;  %v490_v38 = vld [vmem:[#allocation2 + $0x80] sm:$0xff]  ;;  %p379_p11 = por %p378_p10, %p377_p9 }
  0x19   :  { %v99_v32 = vadd.f32 %v64_v24, %v63_v23  ;;  %v68_v34 = vmul.f32 %v476_v29, %v476_v29  ;;  %v69_v36 = vmul.f32 %v478_v30, %v478_v30  ;;  %v70_v37 = vmul.f32 %v480_v31, %v480_v31  ;;  %v492_v39 = vld [vmem:[#allocation2 + $0x88] sm:$0xff]  ;;  %v494_v40 = vld [vmem:[#allocation2 + $0x90] sm:$0xff]  ;;  %v496_v41 = vld [vmem:[#allocation2 + $0x98] sm:$0xff] }
  0x1a   :  { %94 = vadd.xlane.f32.xlu1 %v93_v21  ;;  %v102_v35 = vadd.f32 %v66_v27, %v65_v26  ;;  %v71_v43 = vmul.f32 %v490_v38, %v490_v38  ;;  %v72_v44 = vmul.f32 %v492_v39, %v492_v39  ;;  %v73_v46 = vmul.f32 %v494_v40, %v494_v40  ;;  %v506_v48 = vld [vmem:[#allocation2 + $0xa0] sm:$0xff]  ;;  %v508_v49 = vld [vmem:[#allocation2 + $0xa8] sm:$0xff]  ;;  %v510_v50 = vld [vmem:[#allocation2 + $0xb0] sm:$0xff]  ;;  %p380_p12 = pnand %p379_p11, %p373_p8 }
  0x1b   :  { %v105_v42 = vadd.f32 %v68_v34, %v67_v33  ;;  %v108_v45 = vadd.f32 %v70_v37, %v69_v36  ;;  %v74_v47 = vmul.f32 %v496_v41, %v496_v41  ;;  %v512_v51 = vld [vmem:[#allocation2 + $0xb8] sm:$0xff]  ;;  %v75_v53 = vmul.f32 %v506_v48, %v506_v48  ;;  %v522_v58 = vld [vmem:[#allocation2 + $0xc0] sm:$0xff]  ;;  %v524_v59 = vld [vmem:[#allocation2 + $0xc8] sm:$0xff] }
  0x1c   :  { %91 = vadd.xlane.f32.xlu0 %v90_v22  ;;  %v111_v52 = vadd.f32 %v72_v44, %v71_v43  ;;  %v76_v54 = vmul.f32 %v508_v49, %v508_v49  ;;  %v77_v56 = vmul.f32 %v510_v50, %v510_v50  ;;  %v78_v57 = vmul.f32 %v512_v51, %v512_v51  ;;  %v526_v60 = vld [vmem:[#allocation2 + $0xd0] sm:$0xff]  ;;  %v528_v61 = vld [vmem:[#allocation2 + $0xd8] sm:$0xff]  ;;  %v538_v10 = vld [vmem:[#allocation2 + $0xe0] sm:$0xff] }
  0x1d   :  { %v114_v55 = vadd.f32 %v74_v47, %v73_v46  ;;  %v79_v63 = vmul.f32 %v522_v58, %v522_v58  ;;  %v80_v3 = vmul.f32 %v524_v59, %v524_v59  ;;  %v81_v6 = vmul.f32 %v526_v60, %v526_v60  ;;  %v540_v11 = vld [vmem:[#allocation2 + $0xe8] sm:$0xff]  ;;  %v542_v15 = vld [vmem:[#allocation2 + $0xf0] sm:$0xff]  ;;  %v544_v16 = vld [vmem:[#allocation2 + $0xf8] sm:$0xff] }
  0x1e   :  { %97 = vadd.xlane.f32.xlu1 %v96_v25  ;;  %v117_v62 = vadd.f32 %v76_v54, %v75_v53  ;;  %v120_v4 = vadd.f32 %v78_v57, %v77_v56  ;;  %v82_v9 = vmul.f32 %v528_v61, %v528_v61  ;;  %v83_v21 = vmul.f32 %v538_v10, %v538_v10 }
  0x1f   :  { %v123_v17 = vadd.f32 %v80_v3, %v79_v63  ;;  %v84_v22 = vmul.f32 %v540_v11, %v540_v11  ;;  %v85_v24 = vmul.f32 %v542_v15, %v542_v15  ;;  %v86_v25 = vmul.f32 %v544_v16, %v544_v16 }
  0x20   :  { %100 = vadd.xlane.f32.xlu0 %v99_v32  ;;  %v126_v23 = vadd.f32 %v82_v9, %v81_v6 }
  0x21   :  { %v129_v26 = vadd.f32 %v84_v22, %v83_v21  ;;  %v132_v27 = vadd.f32 %v86_v25, %v85_v24 }
  0x22   :  { %103 = vadd.xlane.f32.xlu1 %v102_v35 }
  0x24   :  { %106 = vadd.xlane.f32.xlu0 %v105_v42 }
  0x26   :  { %109 = vadd.xlane.f32.xlu1 %v108_v45 }
  0x28   :  { %112 = vadd.xlane.f32.xlu0 %v111_v52 }
  0x2a   :  { %115 = vadd.xlane.f32.xlu1 %v114_v55 }
  0x2c   :  { %118 = vadd.xlane.f32.xlu0 %v117_v62 }
  0x2e   :  { %121 = vadd.xlane.f32.xlu1 %v120_v4 }
  0x30   :  { %124 = vadd.xlane.f32.xlu0 %v123_v17 }
  0x32   :  { %127 = vadd.xlane.f32.xlu1 %v126_v23 }
  0x34   :  { %130 = vadd.xlane.f32.xlu0 %v129_v26 }
  0x36   :  { %133 = vadd.xlane.f32.xlu1 %v132_v27 }
  0xa5   :  { %v89_v32 = vpop.xlane.xlu0 %88 }
  0xa6   :  { %v135_v33 = vmax.f32 %v89_v32, 1e-24 }
  0xa7   :  { %v95_v34 = vpop.xlane.xlu1 %94 }
  0xa8   :  { %v137_v35 = vmax.f32 %v95_v34, 1e-24  ;;  %318 = vrsqrt.f32 %v135_v33 }
  0xa9   :  { %v92_v36 = vpop.xlane.xlu0 %91 }
  0xaa   :  { %v136_v37 = vmax.f32 %v92_v36, 1e-24  ;;  %320 = vrsqrt.f32 %v137_v35 }
  0xab   :  { %v98_v42 = vpop.xlane.xlu1 %97 }
  0xac   :  { %322 = vrsqrt.f32 %v136_v37  ;;  %v138_v43 = vmax.f32 %v98_v42, 1e-24 }
  0xad   :  { %v101_v44 = vpop.xlane.xlu0 %100 }
  0xae   :  { %324 = vrsqrt.f32 %v138_v43  ;;  %v139_v45 = vmax.f32 %v101_v44, 1e-24 }
  0xaf   :  { %v104_v46 = vpop.xlane.xlu1 %103 }
  0xb0   :  { %326 = vrsqrt.f32 %v139_v45  ;;  %v140_v54 = vmax.f32 %v104_v46, 1e-24 }
  0xb1   :  { %v107_v56 = vpop.xlane.xlu0 %106 }
  0xb2   :  { %v319_v47 = vpop.eup %318  ;;  %328 = vrsqrt.f32 %v140_v54  ;;  %v141_v3 = vmax.f32 %v107_v56, 1e-24 }
  0xb3   :  { %v168_v52 = vmul.f32 %v319_v47, %v428_v1  ;;  %v167_v53 = vmul.f32 %v319_v47, %v426_v0  ;;  %v110_v0 = vpop.xlane.xlu1 %109 }
  0xb4   :  { %v321_v55 = vpop.eup %320  ;;  %330 = vrsqrt.f32 %v141_v3  ;;  %v142_v9 = vmax.f32 %v110_v0, 1e-24 }
  0xb5   :  { %231 = vxpose.xlu1.b32.start [1/16] %v168_v52, 128  ;;  %199 = vxpose.xlu0.b32.start [1/16] %v167_v53, 128  ;;  %v172_v4 = vmul.f32 %v321_v55, %v442_v8  ;;  %v171_v1 = vmul.f32 %v321_v55, %v440_v7  ;;  %v113_v21 = vpop.xlane.xlu0 %112 }
  0xb6   :  { %v323_v57 = vpop.eup %322  ;;  %332 = vrsqrt.f32 %v142_v9  ;;  %v143_v22 = vmax.f32 %v113_v21, 1e-24 }
  0xb7   :  { %v170_v62 = vmul.f32 %v323_v57, %v436_v5  ;;  %v169_v63 = vmul.f32 %v323_v57, %v430_v2  ;;  %v116_v23 = vpop.xlane.xlu1 %115 }
  0xb8   :  { %v325_v6 = vpop.eup %324  ;;  %334 = vrsqrt.f32 %v143_v22  ;;  %v144_v25 = vmax.f32 %v116_v23, 1e-24 }
  0xb9   :  { %232 = vxpose.xlu1.b32.cont [2/16] %v170_v62, 128  ;;  %200 = vxpose.xlu0.b32.cont [2/16] %v169_v63, 128  ;;  %v174_v17 = vmul.f32 %v325_v6, %v452_v13  ;;  %v173_v5 = vmul.f32 %v325_v6, %v450_v12  ;;  %v119_v26 = vpop.xlane.xlu0 %118 }
  0xba   :  { %v327_v2 = vpop.eup %326  ;;  %336 = vrsqrt.f32 %v144_v25  ;;  %v145_v32 = vmax.f32 %v119_v26, 1e-24 }
  0xbb   :  { %v176_v8 = vmul.f32 %v327_v2, %v460_v18  ;;  %v175_v7 = vmul.f32 %v327_v2, %v454_v14  ;;  %v122_v33 = vpop.xlane.xlu1 %121 }
  0xbc   :  { %v329_v24 = vpop.eup %328  ;;  %338 = vrsqrt.f32 %v145_v32  ;;  %v146_v35 = vmax.f32 %v122_v33, 1e-24 }
  0xbd   :  { %233 = vxpose.xlu1.b32.cont [3/16] %v172_v4, 128  ;;  %201 = vxpose.xlu0.b32.cont [3/16] %v171_v1, 128  ;;  %v178_v13 = vmul.f32 %v329_v24, %v464_v20  ;;  %v177_v12 = vmul.f32 %v329_v24, %v462_v19  ;;  %v125_v36 = vpop.xlane.xlu0 %124 }
  0xbe   :  { %v331_v27 = vpop.eup %330  ;;  %340 = vrsqrt.f32 %v146_v35  ;;  %v147_v42 = vmax.f32 %v125_v36, 1e-24 }
  0xbf   :  { %v180_v18 = vmul.f32 %v331_v27, %v476_v29  ;;  %v179_v14 = vmul.f32 %v331_v27, %v474_v28  ;;  %v128_v43 = vpop.xlane.xlu1 %127 }
  0xc0   :  { %v333_v34 = vpop.eup %332  ;;  %342 = vrsqrt.f32 %v147_v42  ;;  %v148_v45 = vmax.f32 %v128_v43, 1e-24 }
  0xc1   :  { %234 = vxpose.xlu1.b32.cont [4/16] %v174_v17, 128  ;;  %202 = vxpose.xlu0.b32.cont [4/16] %v173_v5, 128  ;;  %v182_v20 = vmul.f32 %v333_v34, %v480_v31  ;;  %v181_v19 = vmul.f32 %v333_v34, %v478_v30  ;;  %v131_v46 = vpop.xlane.xlu0 %130 }
  0xc2   :  { %v335_v37 = vpop.eup %334  ;;  %344 = vrsqrt.f32 %v148_v45  ;;  %v149_v52 = vmax.f32 %v131_v46, 1e-24 }
  0xc3   :  { %v184_v29 = vmul.f32 %v335_v37, %v492_v39  ;;  %v183_v28 = vmul.f32 %v335_v37, %v490_v38  ;;  %v134_v53 = vpop.xlane.xlu1 %133 }
  0xc4   :  { %v337_v44 = vpop.eup %336  ;;  %346 = vrsqrt.f32 %v149_v52  ;;  %v150_v55 = vmax.f32 %v134_v53, 1e-24 }
  0xc5   :  { %235 = vxpose.xlu1.b32.cont [5/16] %v176_v8, 128  ;;  %203 = vxpose.xlu0.b32.cont [5/16] %v175_v7, 128  ;;  %v186_v31 = vmul.f32 %v337_v44, %v496_v41  ;;  %v185_v30 = vmul.f32 %v337_v44, %v494_v40 }
  0xc6   :  { %v339_v47 = vpop.eup %338  ;;  %348 = vrsqrt.f32 %v150_v55 }
  0xc7   :  { %v188_v39 = vmul.f32 %v339_v47, %v508_v49  ;;  %v187_v38 = vmul.f32 %v339_v47, %v506_v48 }
  0xc8   :  { %v341_v54 = vpop.eup %340 }
  0xc9   :  { %236 = vxpose.xlu1.b32.cont [6/16] %v178_v13, 128  ;;  %204 = vxpose.xlu0.b32.cont [6/16] %v177_v12, 128  ;;  %v190_v41 = vmul.f32 %v341_v54, %v512_v51  ;;  %v189_v40 = vmul.f32 %v341_v54, %v510_v50 }
  0xca   :  { %v343_v56 = vpop.eup %342 }
  0xcb   :  { %v192_v57 = vmul.f32 %v343_v56, %v524_v59  ;;  %v191_v49 = vmul.f32 %v343_v56, %v522_v58 }
  0xcc   :  { %v345_v62 = vpop.eup %344 }
  0xcd   :  { %237 = vxpose.xlu1.b32.cont [7/16] %v180_v18, 128  ;;  %205 = vxpose.xlu0.b32.cont [7/16] %v179_v14, 128  ;;  %v194_v48 = vmul.f32 %v345_v62, %v528_v61  ;;  %v193_v63 = vmul.f32 %v345_v62, %v526_v60 }
  0xce   :  { %v347_v3 = vpop.eup %346 }
  0xcf   :  { %v196_v50 = vmul.f32 %v347_v3, %v540_v11  ;;  %v195_v51 = vmul.f32 %v347_v3, %v538_v10 }
  0xd0   :  { %v349_v4 = vpop.eup %348 }
  0xd1   :  { %238 = vxpose.xlu1.b32.cont [8/16] %v182_v20, 128  ;;  %206 = vxpose.xlu0.b32.cont [8/16] %v181_v19, 128  ;;  %v198_v59 = vmul.f32 %v349_v4, %v544_v16  ;;  %v197_v58 = vmul.f32 %v349_v4, %v542_v15 }
  0xd5   :  { %239 = vxpose.xlu1.b32.cont [9/16] %v184_v29, 128  ;;  %207 = vxpose.xlu0.b32.cont [9/16] %v183_v28, 128 }
  0xd9   :  { %240 = vxpose.xlu1.b32.cont [10/16] %v186_v31, 128  ;;  %208 = vxpose.xlu0.b32.cont [10/16] %v185_v30, 128 }
  0xdd   :  { %241 = vxpose.xlu1.b32.cont [11/16] %v188_v39, 128  ;;  %209 = vxpose.xlu0.b32.cont [11/16] %v187_v38, 128 }
  0xe1   :  { %242 = vxpose.xlu1.b32.cont [12/16] %v190_v41, 128  ;;  %210 = vxpose.xlu0.b32.cont [12/16] %v189_v40, 128 }
  0xe5   :  { %243 = vxpose.xlu1.b32.cont [13/16] %v192_v57, 128  ;;  %211 = vxpose.xlu0.b32.cont [13/16] %v191_v49, 128 }
  0xe9   :  { %244 = vxpose.xlu1.b32.cont [14/16] %v194_v48, 128  ;;  %212 = vxpose.xlu0.b32.cont [14/16] %v193_v63, 128 }
  0xed   :  { %245 = vxpose.xlu1.b32.cont [15/16] %v196_v50, 128  ;;  %213 = vxpose.xlu0.b32.cont [15/16] %v195_v51, 128 }
  0xf1   :  { %246 = vxpose.xlu1.b32.end [16/16] %v198_v59, 128  ;;  %214 = vxpose.xlu0.b32.end [16/16] %v197_v58, 128 }
 0x135   :  { %v247_v1 = vpop.trf.xlu1  ;;  %v215_v61 = vpop.trf.xlu0 }
 0x136   :  { %279 = vst [vmem:[#allocation5 + $0x80] sm:$0xff] %v247_v1  ;;  %263 = vst [vmem:[#allocation5] sm:$0xff] %v215_v61 }
 0x139   :  { %v248_v60 = vpop.trf.xlu1  ;;  %v216_v0 = vpop.trf.xlu0 }
 0x13a   :  { %280 = vst [vmem:[#allocation5 + $0x88] sm:$0xff] %v248_v60  ;;  %264 = vst [vmem:[#allocation5 + $0x8] sm:$0xff] %v216_v0 }
 0x13d   :  { %v249_v11 = vpop.trf.xlu1  ;;  %v217_v6 = vpop.trf.xlu0 }
 0x13e   :  { %281 = vst [vmem:[#allocation5 + $0x90] sm:$0xff] %v249_v11  ;;  %265 = vst [vmem:[#allocation5 + $0x10] sm:$0xff] %v217_v6 }
 0x141   :  { %v250_v10 = vpop.trf.xlu1  ;;  %v218_v9 = vpop.trf.xlu0 }
 0x142   :  { %282 = vst [vmem:[#allocation5 + $0x98] sm:$0xff] %v250_v10  ;;  %266 = vst [vmem:[#allocation5 + $0x18] sm:$0xff] %v218_v9 }
 0x145   :  { %v251_v16 = vpop.trf.xlu1  ;;  %v219_v15 = vpop.trf.xlu0 }
 0x146   :  { %283 = vst [vmem:[#allocation5 + $0xa0] sm:$0xff] %v251_v16  ;;  %267 = vst [vmem:[#allocation5 + $0x20] sm:$0xff] %v219_v15 }
 0x149   :  { %v252_v17 = vpop.trf.xlu1  ;;  %v220_v5 = vpop.trf.xlu0 }
 0x14a   :  { %284 = vst [vmem:[#allocation5 + $0xa8] sm:$0xff] %v252_v17  ;;  %268 = vst [vmem:[#allocation5 + $0x28] sm:$0xff] %v220_v5 }
 0x14d   :  { %v253_v21 = vpop.trf.xlu1  ;;  %v221_v2 = vpop.trf.xlu0 }
 0x14e   :  { %285 = vst [vmem:[#allocation5 + $0xb0] sm:$0xff] %v253_v21  ;;  %269 = vst [vmem:[#allocation5 + $0x30] sm:$0xff] %v221_v2 }
 0x151   :  { %v254_v22 = vpop.trf.xlu1  ;;  %v222_v8 = vpop.trf.xlu0 }
 0x152   :  { %286 = vst [vmem:[#allocation5 + $0xb8] sm:$0xff] %v254_v22  ;;  %270 = vst [vmem:[#allocation5 + $0x38] sm:$0xff] %v222_v8 }
 0x155   :  { %v255_v7 = vpop.trf.xlu1  ;;  %v223_v23 = vpop.trf.xlu0 }
 0x156   :  { %287 = vst [vmem:[#allocation5 + $0xc0] sm:$0xff] %v255_v7  ;;  %271 = vst [vmem:[#allocation5 + $0x40] sm:$0xff] %v223_v23 }
 0x159   :  { %v256_v24 = vpop.trf.xlu1  ;;  %v224_v25 = vpop.trf.xlu0 }
 0x15a   :  { %288 = vst [vmem:[#allocation5 + $0xc8] sm:$0xff] %v256_v24  ;;  %272 = vst [vmem:[#allocation5 + $0x48] sm:$0xff] %v224_v25 }
 0x15d   :  { %v257_v13 = vpop.trf.xlu1  ;;  %v225_v12 = vpop.trf.xlu0 }
 0x15e   :  { %289 = vst [vmem:[#allocation5 + $0xd0] sm:$0xff] %v257_v13  ;;  %273 = vst [vmem:[#allocation5 + $0x50] sm:$0xff] %v225_v12 }
 0x161   :  { %v258_v26 = vpop.trf.xlu1  ;;  %v226_v27 = vpop.trf.xlu0 }
 0x162   :  { %290 = vst [vmem:[#allocation5 + $0xd8] sm:$0xff] %v258_v26  ;;  %274 = vst [vmem:[#allocation5 + $0x58] sm:$0xff] %v226_v27 }
 0x165   :  { %v259_v32 = vpop.trf.xlu1  ;;  %v227_v18 = vpop.trf.xlu0 }
 0x166   :  { %291 = vst [vmem:[#allocation5 + $0xe0] sm:$0xff] %v259_v32  ;;  %275 = vst [vmem:[#allocation5 + $0x60] sm:$0xff] %v227_v18 }
 0x169   :  { %v260_v14 = vpop.trf.xlu1  ;;  %v228_v33 = vpop.trf.xlu0 }
 0x16a   :  { %292 = vst [vmem:[#allocation5 + $0xe8] sm:$0xff] %v260_v14  ;;  %276 = vst [vmem:[#allocation5 + $0x68] sm:$0xff] %v228_v33 }
 0x16d   :  { %v261_v34 = vpop.trf.xlu1  ;;  %v229_v35 = vpop.trf.xlu0 }
 0x16e   :  { %293 = vst [vmem:[#allocation5 + $0xf0] sm:$0xff] %v261_v34  ;;  %277 = vst [vmem:[#allocation5 + $0x70] sm:$0xff] %v229_v35 }
 0x171   :  { %v262_v20 = vpop.trf.xlu1  ;;  %v230_v19 = vpop.trf.xlu0 }
 0x172   :  { %294 = vst [vmem:[#allocation5 + $0xf8] sm:$0xff] %v262_v20  ;;  %278 = vst [vmem:[#allocation5 + $0x78] sm:$0xff] %v230_v19 }
 0x173   :  { %383 = shalt.err (!%p380_p12)
}
 0x174   :  { %s384_s24 = scalar_lea.hbm %s599_s1, 4096 }
 0x175   :  { %p385_p13 = scmp.ne.s32.totalorder %s599_s1, %s384_s24  ;;  %p388_p0 = scmp.lt.u32.totalorder %s384_s24, %s599_s1 }
 0x177   :  { %p390_p1 = pnand %p388_p0, %p385_p13 }
 0x179   :  { %393 = shalt.err (!%p390_p1)
}
 0x17a   :  { %s402_s29 = smov 128   ;;  %s403_s30 = smov 8  }
 0x17b   :  { %306 = dma.vmem_to_hbm [thread:$0]  %s301_s20, 4096, %s599_s1, [#allocation4], %s402_s29, %s402_s29, %s403_s30  }
 0x17c   :  { %396 = dma.done.wait [#allocation4], 4096  }
 0x17d   :  { %397 = vsyncadd [#allocation4], 4294963200 }
 0x17e   :  { %310 = vsyncpa [#allocation3], 1 }
 0x17f   :  { %311 = vsyncpa [#allocation4], 1 }

</bundles_post_ra>
